<compile_context>
chip_gen: v7x
topology: tpu7x:2x2x1
jax: 0.10.0
libtpu: 0.0.40
codegen_flags: <defaults>
</compile_context>

<pallas_src>
import jax
import jax.numpy as jnp
from jax.experimental import pallas as pl
from jax.experimental.pallas import tpu as pltpu


# ----------------------------------------------------------------------------
# Kernel
# ----------------------------------------------------------------------------
def _mlp_kernel(x_ref, w1_ref, b1_ref, w2_ref, b2_ref, o_ref):
    # x_ref:  (TB, C, TS)   channel-major activation slab (TB batch elements)
    # w1_ref: (C, C)        first linear weight, PyTorch (out, in) layout
    # b1_ref: (C, 1)        f32
    # w2_ref: (NC, C)       second linear weight, PyTorch (out, in) layout
    # b2_ref: (NC, 1)       f32
    # o_ref:  (TB, NC, TS)
    w1 = w1_ref[...]
    w2 = w2_ref[...]
    b1 = b1_ref[...]
    b2 = b2_ref[...]
    compute_dtype = w1.dtype  # bf16 at large C, f32 otherwise

    tb = x_ref.shape[0]
    for bi in range(tb):  # static, small unrolled loop
        x = x_ref[bi].astype(compute_dtype)
        h = jnp.dot(w1, x, preferred_element_type=jnp.float32) + b1
        h = jnp.maximum(h, 0.0)  # ReLU in f32 (v5e VPU has no bf16)
        y = jnp.dot(w2, h.astype(compute_dtype),
                    preferred_element_type=jnp.float32) + b2
        o_ref[bi] = y.astype(o_ref.dtype)


# ----------------------------------------------------------------------------
# Tiling heuristics
# ----------------------------------------------------------------------------
def _divisors(n):
    return [d for d in range(1, n + 1) if n % d == 0]


def _round_up(x, m):
    return (x + m - 1) // m * m


def _select_tiles(b, c, nc, hw_p, x_bytes, w_bytes, o_bytes):
    """Pick (TB, TS): batch-fold factor and spatial tile, from a VMEM budget."""
    # Conservative budget against v7x (64 MiB physical VMEM), ~25% headroom.
    budget = int(0.75 * (48 << 20))
    resident = 2 * (c * c + nc * c) * w_bytes + 2 * (c + nc) * 4  # weights x2 buffers
    avail = max(budget - resident, 2 << 20)

    # Double-buffered x block + out block cost per 128 spatial lanes (TB=1).
    per_col = 2 * (c * x_bytes + nc * o_bytes) * 128
    cap_ts = min(max(avail // per_col, 1) * 128, 8192)

    # Largest 128-multiple divisor of hw_p that fits the cap (128 always works:
    # hw_p is padded to a multiple of 128 by the wrapper).
    ts = 128
    t = 256
    while t <= min(hw_p, cap_ts):
        if hw_p % t == 0:
            ts = t
        t += 128
    nt = hw_p // ts

    # Batch folding: grow the per-step slab toward ~2 MiB when the spatial
    # extent alone is too small (tiny feature maps).
    step_bytes = (c * x_bytes + nc * o_bytes) * ts
    tb = 1
    for d in _divisors(b):
        if d * step_bytes <= (2 << 20) and 2 * d * step_bytes <= avail:
            tb = d

    # Keep at least 2 grid steps so both v7x TensorCores get work.
    if (b // tb) * nt < 2:
        if b >= 2:
            tb = max(d for d in _divisors(b) if b // d >= 2)
        elif ts >= 256:
            cand = [t for t in range(128, ts, 128)
                    if hw_p % t == 0 and hw_p // t >= 2]
            if cand:
                ts = max(cand)
    return tb, ts


# ----------------------------------------------------------------------------
# Wrapper
# ----------------------------------------------------------------------------
@jax.jit
def mlp_probe_forward(feats, w1, b1, w2, b2):
    """feats: (b, c, h, w) -> (b, num_classes, h, w).

    Weights use PyTorch nn.Linear layout: w1 (c, c), w2 (nc, c),
    biases b1 (c,), b2 (nc,).
    """
    b, c, h, w = feats.shape
    nc = w2.shape[0]
    hw = h * w
    hw_p = _round_up(hw, 128)  # keep output stores lane-dense

    # bf16 matmul operands at large C (f32 accumulation in-kernel); keeps the
    # kernel HBM-bound and halves weight residency.  Small C stays f32.
    if c >= 256 and w1.dtype == jnp.float32:
        compute_dtype = jnp.bfloat16
    else:
        compute_dtype = w1.dtype
    w1c = w1.astype(compute_dtype)
    w2c = w2.astype(compute_dtype)
    b1c = b1.astype(jnp.float32).reshape(c, 1)
    b2c = b2.astype(jnp.float32).reshape(nc, 1)

    x_bytes = feats.dtype.itemsize
    o_bytes = feats.dtype.itemsize
    w_bytes = jnp.dtype(compute_dtype).itemsize

    tb, ts = _select_tiles(b, c, nc, hw_p, x_bytes, w_bytes, o_bytes)
    grid = (b // tb, hw_p // ts)

    # Free (contiguous) reshape: NCHW -> (B, C, H*W); pad spatial only if odd.
    x = feats.reshape(b, c, hw)
    if hw_p != hw:
        x = jnp.pad(x, ((0, 0), (0, 0), (0, hw_p - hw)))

    # Explicit scoped-VMEM limit derived from the actual block footprint.
    resident = 2 * ((c * c + nc * c) * w_bytes + (c + nc) * 4)
    need = 2 * tb * (c * x_bytes + nc * o_bytes) * ts + resident
    vmem_limit = int(min(max(2 * need, 32 << 20), 48 << 20))

    cost = pl.CostEstimate(
        flops=2 * b * hw_p * (c * c + nc * c),
        bytes_accessed=(b * hw_p * (c * x_bytes + nc * o_bytes)
                        + (c * c + nc * c) * w_bytes + (c + nc) * 4),
        transcendentals=0,
    )

    out = pl.pallas_call(
        _mlp_kernel,
        out_shape=jax.ShapeDtypeStruct((b, nc, hw_p), feats.dtype),
        grid=grid,
        in_specs=[
            pl.BlockSpec((tb, c, ts), lambda bi, si: (bi, 0, si)),  # activations
            pl.BlockSpec((c, c), lambda bi, si: (0, 0)),            # w1 (resident)
            pl.BlockSpec((c, 1), lambda bi, si: (0, 0)),            # b1
            pl.BlockSpec((nc, c), lambda bi, si: (0, 0)),           # w2 (resident)
            pl.BlockSpec((nc, 1), lambda bi, si: (0, 0)),           # b2
        ],
        out_specs=pl.BlockSpec((tb, nc, ts), lambda bi, si: (bi, 0, si)),
        compiler_params=pltpu.CompilerParams(
            dimension_semantics=("parallel", "parallel"),
            vmem_limit_bytes=vmem_limit,
        ),
        cost_estimate=cost,
    )(x, w1c, b1c, w2c, b2c)

    if hw_p != hw:
        out = out[..., :hw]
    # Free reshape back: (B, NC, H*W) -> (B, NC, H, W).
    return out.reshape(b, nc, h, w)


# ----------------------------------------------------------------------------
# Self-test
# ----------------------------------------------------------------------------
def _init_params(key, input_dim, num_classes, dtype=jnp.float32):
    """Deterministic init matching nn.Linear shapes: weight (out, in), bias (out,)."""
    k1, k2, k3, k4 = jax.random.split(key, 4)
    bound = 1.0 / (input_dim ** 0.5)
    w1 = jax.random.uniform(k1, (input_dim, input_dim), dtype, -bound, bound)
    b1 = jax.random.uniform(k2, (input_dim,), dtype, -bound, bound)
    w2 = jax.random.uniform(k3, (num_classes, input_dim), dtype, -bound, bound)
    b2 = jax.random.uniform(k4, (num_classes,), dtype, -bound, bound)
    return w1, b1, w2, b2


def _reference(feats, w1, b1, w2, b2):
    b, c, h, w = feats.shape
    nc = w2.shape[0]
    x2d = jnp.transpose(feats, (0, 2, 3, 1)).reshape(b * h * w, c)
    hdd = jnp.maximum(jnp.dot(x2d, w1.T, precision="highest") + b1, 0.0)
    out = jnp.dot(hdd, w2.T, precision="highest") + b2
    return jnp.transpose(out.reshape(b, h, w, nc), (0, 3, 1, 2))


def _check(B, C, H, W, NUM_CLASSES, key):
    k_x, k_p = jax.random.split(key)
    feats = jax.random.normal(k_x, (B, C, H, W), jnp.float32)
    w1, b1, w2, b2 = _init_params(k_p, C, NUM_CLASSES)

    out = mlp_probe_forward(feats, w1, b1, w2, b2)
    out = jax.block_until_ready(out)

    ref = _reference(feats, w1, b1, w2, b2)
    assert out.shape == (B, NUM_CLASSES, H, W)
    assert jnp.allclose(out, ref, atol=1e-3, rtol=1e-3), (
        f"mismatch: max abs err {jnp.max(jnp.abs(out - ref))}")


if __name__ == "__main__":
    key = jax.random.PRNGKey(0)
    k1, k2 = jax.random.split(key)

    # Small shapes consistent with the module: channels = input_dim, batch = 2.
    # Case 1: 128-friendly spatial extent (16x16 -> lane-dense, no padding).
    _check(B=2, C=32, H=16, W=16, NUM_CLASSES=8, key=k1)
    # Case 2: odd spatial extent (14x14 = 196) exercising the lane padding path.
    _check(B=2, C=16, H=14, W=14, NUM_CLASSES=8, key=k2)

    print("KERNEL_OK")
</pallas_src>

<mosaic_0001>
module attributes {stable_mosaic.version = 11 : i64} {
  func.func @_mlp_kernel(%arg0: i32, %arg1: i32, %arg2: memref<1x32x256xf32, #tpu.memory_space<vmem>>, %arg3: memref<32x32xf32, #tpu.memory_space<vmem>>, %arg4: memref<32x1xf32, #tpu.memory_space<vmem>>, %arg5: memref<8x32xf32, #tpu.memory_space<vmem>>, %arg6: memref<8x1xf32, #tpu.memory_space<vmem>>, %arg7: memref<1x8x256xf32, #tpu.memory_space<vmem>>) attributes {dimension_semantics = [#tpu.dimension_semantics<parallel>, #tpu.dimension_semantics<parallel>], iteration_bounds = array<i64: 2, 1>, scalar_prefetch = 0 : i64, scratch_operands = 0 : i64, tpu.core_type = #tpu.core_type<tc>, window_params = [{transform_indices = @transform_0, window_bounds = array<i64: 1, 32, 256>}, {pipeline_mode = #tpu.pipeline_mode<synchronous>, transform_indices = @transform_1, window_bounds = array<i64: 32, 32>}, {pipeline_mode = #tpu.pipeline_mode<synchronous>, transform_indices = @transform_2, window_bounds = array<i64: 32, 1>}, {pipeline_mode = #tpu.pipeline_mode<synchronous>, transform_indices = @transform_3, window_bounds = array<i64: 8, 32>}, {pipeline_mode = #tpu.pipeline_mode<synchronous>, transform_indices = @transform_4, window_bounds = array<i64: 8, 1>}, {transform_indices = @transform_5, window_bounds = array<i64: 1, 8, 256>}]} {
    %c0 = arith.constant 0 : index
    %c0_0 = arith.constant 0 : index
    %0 = vector.load %arg3[%c0, %c0_0] : memref<32x32xf32, #tpu.memory_space<vmem>>, vector<32x32xf32>
    %c0_1 = arith.constant 0 : index
    %c0_2 = arith.constant 0 : index
    %1 = vector.load %arg5[%c0_1, %c0_2] : memref<8x32xf32, #tpu.memory_space<vmem>>, vector<8x32xf32>
    %c0_3 = arith.constant 0 : index
    %c0_4 = arith.constant 0 : index
    %2 = vector.load %arg4[%c0_3, %c0_4] : memref<32x1xf32, #tpu.memory_space<vmem>>, vector<32x1xf32>
    %c0_5 = arith.constant 0 : index
    %c0_6 = arith.constant 0 : index
    %3 = vector.load %arg6[%c0_5, %c0_6] : memref<8x1xf32, #tpu.memory_space<vmem>>, vector<8x1xf32>
    %c0_7 = arith.constant 0 : index
    %c0_8 = arith.constant 0 : index
    %c0_9 = arith.constant 0 : index
    %4 = vector.load %arg2[%c0_7, %c0_8, %c0_9] : memref<1x32x256xf32, #tpu.memory_space<vmem>>, vector<1x32x256xf32>
    %5 = vector.shape_cast %4 : vector<1x32x256xf32> to vector<32x256xf32>
    %cst = arith.constant dense<0.000000e+00> : vector<32x256xf32>
    %6 = tpu.matmul %0, %5, %cst {dimension_numbers = #tpu.dot_dimension_numbers<[1], [0], [0], [1], [0, 0, 1, 1], [], []>} : vector<32x32xf32>, vector<32x256xf32>, vector<32x256xf32> -> vector<32x256xf32>
    %7 = vector.broadcast %2 : vector<32x1xf32> to vector<32x256xf32>
    %8 = arith.addf %6, %7 : vector<32x256xf32>
    %cst_10 = arith.constant 0.000000e+00 : f32
    %9 = vector.broadcast %cst_10 : f32 to vector<32x256xf32>
    %10 = arith.maximumf %8, %9 : vector<32x256xf32>
    %cst_11 = arith.constant dense<0.000000e+00> : vector<8x256xf32>
    %11 = tpu.matmul %1, %10, %cst_11 {dimension_numbers = #tpu.dot_dimension_numbers<[1], [0], [0], [1], [0, 0, 1, 1], [], []>} : vector<8x32xf32>, vector<32x256xf32>, vector<8x256xf32> -> vector<8x256xf32>
    %12 = vector.broadcast %3 : vector<8x1xf32> to vector<8x256xf32>
    %13 = arith.addf %11, %12 : vector<8x256xf32>
    %c0_12 = arith.constant 0 : index
    %c0_13 = arith.constant 0 : index
    %c0_14 = arith.constant 0 : index
    %14 = vector.load %arg7[%c0_12, %c0_13, %c0_14] : memref<1x8x256xf32, #tpu.memory_space<vmem>>, vector<1x8x256xf32>
    %15 = vector.shape_cast %14 : vector<1x8x256xf32> to vector<8x256xf32>
    %16 = vector.shape_cast %13 : vector<8x256xf32> to vector<1x8x256xf32>
    tpu.vector_store %arg7[%c0_12, %c0_13, %c0_14], %16 {strides = array<i32>} : memref<1x8x256xf32, #tpu.memory_space<vmem>>, vector<1x8x256xf32>,
    return
  }
  func.func @transform_0(%arg0: i32, %arg1: i32) -> (i32, i32, i32) {
    %c0_i32 = arith.constant 0 : i32
    %c0_i32_0 = arith.constant 0 : i32
    return %arg0, %c0_i32, %arg1 : i32, i32, i32
  }
  func.func @transform_1(%arg0: i32, %arg1: i32) -> (i32, i32) {
    %c0_i32 = arith.constant 0 : i32
    %c0_i32_0 = arith.constant 0 : i32
    %c0_i32_1 = arith.constant 0 : i32
    return %c0_i32, %c0_i32_0 : i32, i32
  }
  func.func @transform_2(%arg0: i32, %arg1: i32) -> (i32, i32) {
    %c0_i32 = arith.constant 0 : i32
    %c0_i32_0 = arith.constant 0 : i32
    %c0_i32_1 = arith.constant 0 : i32
    return %c0_i32, %c0_i32_0 : i32, i32
  }
  func.func @transform_3(%arg0: i32, %arg1: i32) -> (i32, i32) {
    %c0_i32 = arith.constant 0 : i32
    %c0_i32_0 = arith.constant 0 : i32
    %c0_i32_1 = arith.constant 0 : i32
    return %c0_i32, %c0_i32_0 : i32, i32
  }
  func.func @transform_4(%arg0: i32, %arg1: i32) -> (i32, i32) {
    %c0_i32 = arith.constant 0 : i32
    %c0_i32_0 = arith.constant 0 : i32
    %c0_i32_1 = arith.constant 0 : i32
    return %c0_i32, %c0_i32_0 : i32, i32
  }
  func.func @transform_5(%arg0: i32, %arg1: i32) -> (i32, i32, i32) {
    %c0_i32 = arith.constant 0 : i32
    %c0_i32_0 = arith.constant 0 : i32
    return %arg0, %c0_i32, %arg1 : i32, i32, i32
  }
}

</mosaic_0001>

<bundles_post_ra>
// kernel: mlp_probe_forward.1
= control target key start
LH: loop header
LB: loop body
LE: loop exit
PB: predicated region body
PF: predicated region fallthrough
CT: control target
= control target key end

     0   :  { %s698_s18 = smov 0   ;;  %s700_s19 = smov 0   ;;  %s770_s0 = inlined_call_operand.vmem [shape: f32[2,32,256], index: 0, kind: input, shape index: {}]   ;;  %s771_s1 = inlined_call_operand.vmem [shape: f32[32,32], index: 1, kind: input, shape index: {}]   ;;  %s772_s2 = inlined_call_operand.vmem [shape: f32[32,1], index: 2, kind: input, shape index: {}]   ;;  %s773_s3 = inlined_call_operand.vmem [shape: f32[8,32], index: 3, kind: input, shape index: {}]   ;;  %s774_s4 = inlined_call_operand.vmem [shape: f32[8,1], index: 4, kind: input, shape index: {}]   ;;  %s775_s5 = inlined_call_operand.vmem [shape: f32[2,8,256], index: 5, kind: output, shape index: {}]  }
   0x1   :  { %s702_s20 = smov 0  }
   0x2 LB: > { %s27_s21 = sadd.s32 1, %s660_s19  ;;  %p584_p0 = scmp.ge.s32.totalorder %s664_s20, 1  ;;  %s664_s20 = sphi %s702_s20, %s15_s20   ;;  %s660_s19 = sphi %s700_s19, %s777_s19   ;;  %s656_s18 = sphi %s698_s18, %s776_s18  }
   0x3   : > { %p29_p1 = scmp.ge.s32.totalorder %s27_s21, 2  ;;  %p208_p2 = scmp.lt.s32.totalorder %s664_s20, 3 }
   0x5   : > { %s779_s21 = smov (%p29_p1, %s27_s21), 0  ;;  %p209_p3 = pnand %p584_p0, %p208_p2 }
   0x6   : > { %p245_p4 = scmp.lt.s32.totalorder (!%p209_p3), %s656_s18, 1  ;;  %v666_v0 = vmov (!%p209_p3), 0.0   ;;  %v269_v1 = vld [vmem:[%s772_s2] sm:$0xff] (!%p209_p3)  ;;  %v667_v2 = vmov (!%p209_p3), 0   ;;  %v271_v3 = vld [vmem:[%s772_s2 + $0x10] sm:$0xff] (!%p209_p3)  ;;  %v270_v4 = vld [vmem:[%s772_s2 + $0x8] sm:$0xff] (!%p209_p3) }
   0x7   : > { %212 = sbr.rel (%p209_p3) target bundleno = 479 (0x1df), region = 40  ;;  %379 = vmatprep.mubr.f32.mxu0 (!%p209_p3), %v666_v0  ;;  %484 = vmatprep.mubr.f32.mxu1 (!%p209_p3), %v666_v0  ;;  %v272_v5 = vld [vmem:[%s772_s2 + $0x18] sm:$0xff] (!%p209_p3)  ;;  %v273_v17 = vld [vmem:[%s774_s4] sm:$0xff] (!%p209_p3)  ;;  %vm302_vm0 = vcmask (!%p209_p3), 261120   ;;  %v265_v20 = vld [vmem:[%s771_s1 + $0x8] sm:$0xff] (!%p209_p3) }
   0x8   : > { %640 = vset.pattern.permute.xlu0 (!%p209_p3), %v667_v2  ;;  %641 = vset.pattern.permute.xlu1 (!%p209_p3), %v667_v2  ;;  %v264_v19 = vld [vmem:[%s771_s1] sm:$0xff] (!%p209_p3)  ;;  %v266_v21 = vld [vmem:[%s771_s1 + $0x10] sm:$0xff] (!%p209_p3)  ;;  %v267_v22 = vld [vmem:[%s771_s1 + $0x18] sm:$0xff] (!%p209_p3) }
   0x9   : > { %284 = vperm.xlu0 (!%p209_p3), %640, %v269_v1   ;;  %294 = vperm.xlu1 (!%p209_p3), %641, %v271_v3   ;;  %v268_v55 = vld [vmem:[%s773_s3] sm:$0xff] (!%p209_p3) }
   0xd   : > { %289 = vperm.xlu0 (!%p209_p3), %640, %v270_v4   ;;  %299 = vperm.xlu1 (!%p209_p3), %641, %v272_v5  }
   0xe   : > { %s781_s18 = smov (!%p245_p4, %s656_s18), 1 }
   0xf   : > { %s596_s26 = sshll.u32 %s781_s18, 6  ;;  %s597_s25 = sshll.u32 %s781_s18, 4 }
  0x10   : > { %s252_s8 = scalar_lea.vmem %s770_s0, %s596_s26  ;;  %s262_s28 = scalar_lea.vmem %s775_s5, %s597_s25 }
  0x11   : > { %v275_v6 = vld [vmem:[%s252_s8 + $0x8] sm:$0xff]  ;;  %v277_v7 = vld [vmem:[%s252_s8 + $0x18] sm:$0xff]  ;;  %v274_v8 = vld [vmem:[%s252_s8] sm:$0xff]  ;;  %414 = vperm.xlu0 %640, %v273_v17  }
  0x12   : > { %v598_v9 = vpack.c.bf16 %v277_v7, %v275_v6  ;;  %v276_v10 = vld [vmem:[%s252_s8 + $0x10] sm:$0xff]  ;;  %v279_v11 = vld [vmem:[%s252_s8 + $0x28] sm:$0xff]  ;;  %v281_v12 = vld [vmem:[%s252_s8 + $0x38] sm:$0xff] }
  0x13   : > { %v600_v13 = vpack.c.bf16 %v276_v10, %v274_v8  ;;  %v602_v14 = vpack.c.bf16 %v281_v12, %v279_v11  ;;  %v278_v15 = vld [vmem:[%s252_s8 + $0x20] sm:$0xff]  ;;  %v280_v16 = vld [vmem:[%s252_s8 + $0x30] sm:$0xff] }
  0x14   : > { %599 = vmatprep.subr.bf16.mxu0 %v598_v9  ;;  %v604_v18 = vpack.c.bf16 %v280_v16, %v278_v15 }
  0x15   : > { %601 = vmatpush1.bf16.msra.mxu0 %v600_v13 }
  0x16   : > { %603 = vmatprep.subr.bf16.mxu0 %v602_v14 }
  0x19   : > { %605 = vmatpush1.bf16.msra.mxu0 %v604_v18 }
  0x1c   : > { %589 = vmatmul.mubr.msk.f32.vlgmr.msra.gmra.mrb[0].mxu0 %vm302_vm0, %v264_v19 }
  0x1d   : > { %385 = vmatprep.mubr.f32.mxu0 %v666_v0 }
  0x20   : > { %590 = vmatmul.mubr.msk.f32.gmra.mrb[2].mxu0 %vm302_vm0, %v265_v20 }
  0x21   : > { %391 = vmatprep.mubr.f32.mxu0 %v666_v0 }
  0x24   : > { %591 = vmatmul.mubr.msk.f32.gmra.mrb[4].mxu0 %vm302_vm0, %v266_v21 }
  0x25   : > { %397 = vmatprep.mubr.f32.mxu0 %v666_v0 }
  0x28   : > { %592 = vmatmul.mubr.msk.f32.gmra.mrb[6].mxu0 %vm302_vm0, %v267_v22 }
  0x88   : > { %v285_v23 = vpop.permute.xlu0 %284  ;;  %v295_v32 = vpop.permute.xlu1 %294 }
  0x8c   : > { %v290_v27 = vpop.permute.xlu0 %289  ;;  %v300_v43 = vpop.permute.xlu1 %299 }
  0x90   : > { %v415_v56 = vpop.permute.xlu0 %414 }
  0xef   : > { %v381_v24 = vpop.f32.mrb[0].mxu0 }
  0xf0   : > { %v383_v25 = vpop.f32.mrb[1].mxu0  ;;  %v382_v26 = vadd.f32 %v381_v24, %v285_v23 }
  0xf1   : > { %v384_v28 = vadd.f32 %v383_v25, %v285_v23 }
  0xf2   : > { %v404_v34 = vmax.f32 %v382_v26, 0.0 }
  0xf3   : > { %v387_v29 = vpop.f32.mrb[2].mxu0  ;;  %v405_v36 = vmax.f32 %v384_v28, 0.0 }
  0xf4   : > { %v388_v30 = vadd.f32 %v387_v29, %v290_v27  ;;  %v389_v31 = vpop.f32.mrb[3].mxu0 }
  0xf5   : > { %v390_v33 = vadd.f32 %v389_v31, %v290_v27 }
  0xf6   : > { %v406_v35 = vmax.f32 %v388_v30, 0.0 }
  0xf7   : > { %v407_v37 = vmax.f32 %v390_v33, 0.0  ;;  %v393_v38 = vpop.f32.mrb[4].mxu0 }
  0xf8   : > { %v395_v39 = vpop.f32.mrb[5].mxu0  ;;  %v608_v40 = vpack.c.bf16 %v406_v35, %v404_v34  ;;  %v394_v42 = vadd.f32 %v393_v38, %v295_v32 }
  0xf9   : > { %v606_v41 = vpack.c.bf16 %v407_v37, %v405_v36  ;;  %v396_v44 = vadd.f32 %v395_v39, %v295_v32 }
  0xfa   : > { %v408_v49 = vmax.f32 %v394_v42, 0.0 }
  0xfb   : > { %v399_v45 = vpop.f32.mrb[6].mxu0  ;;  %607 = vmatprep.subr.bf16.mxu1 %v606_v41  ;;  %v409_v51 = vmax.f32 %v396_v44, 0.0 }
  0xfc   : > { %v400_v46 = vadd.f32 %v399_v45, %v300_v43  ;;  %v401_v47 = vpop.f32.mrb[7].mxu0  ;;  %609 = vmatpush1.bf16.msra.mxu1 %v608_v40 }
  0xfd   : > { %v402_v48 = vadd.f32 %v401_v47, %v300_v43 }
  0xfe   : > { %v410_v50 = vmax.f32 %v400_v46, 0.0 }
  0xff   : > { %v411_v52 = vmax.f32 %v402_v48, 0.0 }
 0x100   : > { %v612_v53 = vpack.c.bf16 %v410_v50, %v408_v49 }
 0x101   : > { %v610_v54 = vpack.c.bf16 %v411_v52, %v409_v51 }
 0x103   : > { %611 = vmatprep.subr.bf16.mxu1 %v610_v54 }
 0x104   : > { %613 = vmatpush1.bf16.msra.mxu1 %v612_v53 }
 0x107   : > { %593 = vmatmul.mubr.msk.f32.vlgmr.msra.gmra.mrb[0].mxu1 %vm302_vm0, %v268_v55 }
 0x1da   : > { %v486_v57 = vpop.f32.mrb[0].mxu1 }
 0x1db   : > { %v487_v58 = vadd.f32 %v486_v57, %v415_v56  ;;  %v488_v59 = vpop.f32.mrb[1].mxu1 }
 0x1dc   : > { %v489_v60 = vadd.f32 %v488_v59, %v415_v56 }
 0x1dd   : > { %491 = vst [vmem:[%s262_s28] sm:$0xff] %v487_v58 }
 0x1de   : > { %492 = vst [vmem:[%s262_s28 + $0x8] sm:$0xff] %v489_v60 }
 0x1df PF: > { %s15_s20 = sadd.s32 1, %s664_s20   ;;  %s776_s18 = smov %s660_s19 }
 0x1e0   : > { %p12_p5 = scmp.ge.s32.totalorder %s15_s20, 4   ;;  %s777_s19 = smov %s779_s21 }
 0x1e2   :  { %14 = sbr.rel (!%p12_p5) target bundleno = 2 (0x2), region = 70 }

</bundles_post_ra>
